<compile_context>
chip_gen: v7x
topology: tpu7x:2x2x1
jax: 0.10.0
libtpu: 0.0.40
codegen_flags: <defaults>
</compile_context>

<pallas_src>
import jax
import jax.numpy as jnp
from jax.experimental import pallas as pl
from jax.experimental.pallas import tpu as pltpu  # noqa: F401  (TPU backend)

EPS = 1e-5  # PyTorch BatchNorm1d default eps


def _hr_kernel(x_ref, w0_ref, w1_ref, p_ref, out_ref):
    def batchnorm(h):
        # One-pass batch statistics (training-mode, biased variance).
        # The two sublane reductions are independent (overlap on the XLU).
        inv_b = 1.0 / h.shape[0]
        s = jnp.sum(h, axis=0, keepdims=True)
        s2 = jnp.sum(h * h, axis=0, keepdims=True)
        mean = s * inv_b
        var = jnp.maximum(s2 * inv_b - mean * mean, 0.0)  # guard fp cancellation
        return (h - mean) * jax.lax.rsqrt(var + EPS)

    # Packed small params: row 0 = b0, row 1 = b1, row 2 = w2 (as a row),
    # row 3 col 0 = b2.  One DMA instead of four.
    p = p_ref[...]
    b0 = p[0:1, :]
    b1 = p[1:2, :]
    w2 = p[2:3, :]
    b2 = p[3:4, 0:1]

    # batchnorm1 over image_size features
    x = batchnorm(x_ref[...])

    # fc0 + relu  (MXU, f32 accumulate)
    h = jnp.dot(x, w0_ref[...], preferred_element_type=jnp.float32) + b0
    h = jnp.maximum(h, 0.0)

    # batchnorm2 (first use)
    h = batchnorm(h)

    # fc1 + relu
    h = jnp.dot(h, w1_ref[...], preferred_element_type=jnp.float32) + b1
    h = jnp.maximum(h, 0.0)

    # batchnorm2 (second use; same module in PyTorch -> same op here)
    h = batchnorm(h)

    # fc2 (N=1): VPU broadcast-mul + lane reduction — no MXU round-trip for a
    # single useful output column.  Padded w2 lanes are zero, contribute 0.
    o = jnp.sum(h * w2, axis=1, keepdims=True) + b2
    o = jnp.maximum(o, 0.0)

    # sigmoid via a single tanh transcendental: sigmoid(o) = 0.5*(tanh(o/2)+1)
    out_ref[...] = (0.5 * (jnp.tanh(0.5 * o) + 1.0)).astype(out_ref.dtype)


def hr_module_forward(x, params):
    """x: any shape flattening to (-1, image_size); returns (B, 1) float32."""
    w0, b0, w1, b1, w2, b2 = params
    image_size, H = w0.shape
    H_pad = max(128, ((H + 127) // 128) * 128)  # lane-dense hidden dim

    x2d = x.reshape(-1, image_size).astype(jnp.float32)
    B, D = x2d.shape

    # Zero-pad the hidden dimension to H_pad (padded columns stay identically
    # zero through BN/ReLU/fc2, so semantics are unchanged).
    w0_p = jnp.zeros((D, H_pad), jnp.float32).at[:, :H].set(w0.astype(jnp.float32))
    w1_p = jnp.zeros((H_pad, H_pad), jnp.float32).at[:H, :H].set(w1.astype(jnp.float32))

    # Pack all small per-column params into one (4, H_pad) f32 array.
    packed = jnp.zeros((4, H_pad), jnp.float32)
    packed = packed.at[0, :H].set(b0.reshape(-1).astype(jnp.float32))
    packed = packed.at[1, :H].set(b1.reshape(-1).astype(jnp.float32))
    packed = packed.at[2, :H].set(w2.reshape(-1).astype(jnp.float32))
    packed = packed.at[3, 0].set(b2.reshape(-1)[0].astype(jnp.float32))

    full = lambda shape: pl.BlockSpec(shape, lambda: tuple(0 for _ in shape))

    return pl.pallas_call(
        _hr_kernel,
        out_shape=jax.ShapeDtypeStruct((B, 1), jnp.float32),
        grid=(),
        in_specs=[
            full((B, D)),            # x        (f32)
            full((D, H_pad)),        # w0 padded
            full((H_pad, H_pad)),    # w1 padded
            full((4, H_pad)),        # packed [b0; b1; w2_row; b2@(3,0)]
        ],
        out_specs=full((B, 1)),
    )(x2d, w0_p, w1_p, packed)


def init_params(key, image_size, hidden=64):
    """Deterministic PyTorch-style Linear init: U(-1/sqrt(fan_in), 1/sqrt(fan_in))."""
    def linear(k, fan_in, fan_out):
        kw, kb = jax.random.split(k)
        bound = 1.0 / jnp.sqrt(jnp.float32(fan_in))
        w = jax.random.uniform(kw, (fan_in, fan_out), jnp.float32, -bound, bound)
        b = jax.random.uniform(kb, (1, fan_out), jnp.float32, -bound, bound)
        return w, b

    k0, k1, k2 = jax.random.split(key, 3)
    w0, b0 = linear(k0, image_size, hidden)
    w1, b1 = linear(k1, hidden, hidden)
    w2, b2 = linear(k2, hidden, 1)
    return (w0, b0, w1, b1, w2, b2)


if __name__ == "__main__":
    key = jax.random.PRNGKey(0)
    k_param, k_x = jax.random.split(key)

    # Small "image" input: batch=8 of 16x16 images -> image_size = 256.
    batch, side = 8, 16
    image_size = side * side

    params = init_params(k_param, image_size)
    x = jax.random.normal(k_x, (batch, side, side), jnp.float32)

    out = hr_module_forward(x, params)
    out = jax.block_until_ready(out)

    assert out.shape == (batch, 1)
    assert bool(jnp.all(jnp.isfinite(out)))
    assert bool(jnp.all((out >= 0.0) & (out <= 1.0)))
    print("KERNEL_OK")
</pallas_src>

<mosaic_0001>
module attributes {stable_mosaic.version = 11 : i64} {
  func.func @_hr_kernel(%arg0: memref<8x256xf32, #tpu.memory_space<vmem>>, %arg1: memref<256x128xf32, #tpu.memory_space<vmem>>, %arg2: memref<128x128xf32, #tpu.memory_space<vmem>>, %arg3: memref<4x128xf32, #tpu.memory_space<vmem>>, %arg4: memref<8x1xf32, #tpu.memory_space<vmem>>) attributes {dimension_semantics = [], scalar_prefetch = 0 : i64, scratch_operands = 0 : i64, tpu.core_type = #tpu.core_type<tc>} {
    %c0 = arith.constant 0 : index
    %c0_0 = arith.constant 0 : index
    %0 = vector.load %arg3[%c0, %c0_0] : memref<4x128xf32, #tpu.memory_space<vmem>>, vector<4x128xf32>
    %1 = vector.extract_strided_slice %0 {offsets = [0, 0], sizes = [1, 128], strides = [1, 1]} : vector<4x128xf32> to vector<1x128xf32>
    %2 = vector.extract_strided_slice %0 {offsets = [1, 0], sizes = [1, 128], strides = [1, 1]} : vector<4x128xf32> to vector<1x128xf32>
    %3 = vector.extract_strided_slice %0 {offsets = [2, 0], sizes = [1, 128], strides = [1, 1]} : vector<4x128xf32> to vector<1x128xf32>
    %4 = vector.extract_strided_slice %0 {offsets = [3, 0], sizes = [1, 1], strides = [1, 1]} : vector<4x128xf32> to vector<1x1xf32>
    %c0_1 = arith.constant 0 : index
    %c0_2 = arith.constant 0 : index
    %5 = vector.load %arg0[%c0_1, %c0_2] : memref<8x256xf32, #tpu.memory_space<vmem>>, vector<8x256xf32>
    %cst = arith.constant dense<0.000000e+00> : vector<256xf32>
    %6 = vector.multi_reduction <add>, %5, %cst [0] : vector<8x256xf32> to vector<256xf32>
    %7 = vector.shape_cast %6 : vector<256xf32> to vector<1x256xf32>
    %8 = arith.mulf %5, %5 : vector<8x256xf32>
    %cst_3 = arith.constant dense<0.000000e+00> : vector<256xf32>
    %9 = vector.multi_reduction <add>, %8, %cst_3 [0] : vector<8x256xf32> to vector<256xf32>
    %10 = vector.shape_cast %9 : vector<256xf32> to vector<1x256xf32>
    %cst_4 = arith.constant 1.250000e-01 : f32
    %11 = vector.broadcast %cst_4 : f32 to vector<1x256xf32>
    %12 = arith.mulf %7, %11 : vector<1x256xf32>
    %cst_5 = arith.constant 1.250000e-01 : f32
    %13 = vector.broadcast %cst_5 : f32 to vector<1x256xf32>
    %14 = arith.mulf %10, %13 : vector<1x256xf32>
    %15 = arith.mulf %12, %12 : vector<1x256xf32>
    %16 = arith.subf %14, %15 : vector<1x256xf32>
    %cst_6 = arith.constant 0.000000e+00 : f32
    %17 = vector.broadcast %cst_6 : f32 to vector<1x256xf32>
    %18 = arith.maximumf %16, %17 : vector<1x256xf32>
    %19 = vector.broadcast %12 : vector<1x256xf32> to vector<8x256xf32>
    %20 = arith.subf %5, %19 : vector<8x256xf32>
    %cst_7 = arith.constant 9.99999974E-6 : f32
    %21 = vector.broadcast %cst_7 : f32 to vector<1x256xf32>
    %22 = arith.addf %18, %21 : vector<1x256xf32>
    %23 = math.rsqrt %22 : vector<1x256xf32>
    %24 = vector.broadcast %23 : vector<1x256xf32> to vector<8x256xf32>
    %25 = arith.mulf %20, %24 : vector<8x256xf32>
    %c0_8 = arith.constant 0 : index
    %c0_9 = arith.constant 0 : index
    %26 = vector.load %arg1[%c0_8, %c0_9] : memref<256x128xf32, #tpu.memory_space<vmem>>, vector<256x128xf32>
    %cst_10 = arith.constant dense<0.000000e+00> : vector<8x128xf32>
    %27 = tpu.matmul %25, %26, %cst_10 {dimension_numbers = #tpu.dot_dimension_numbers<[1], [0], [0], [1], [0, 0, 1, 1], [], []>} : vector<8x256xf32>, vector<256x128xf32>, vector<8x128xf32> -> vector<8x128xf32>
    %28 = vector.broadcast %1 : vector<1x128xf32> to vector<8x128xf32>
    %29 = arith.addf %27, %28 : vector<8x128xf32>
    %cst_11 = arith.constant 0.000000e+00 : f32
    %30 = vector.broadcast %cst_11 : f32 to vector<8x128xf32>
    %31 = arith.maximumf %29, %30 : vector<8x128xf32>
    %cst_12 = arith.constant dense<0.000000e+00> : vector<128xf32>
    %32 = vector.multi_reduction <add>, %31, %cst_12 [0] : vector<8x128xf32> to vector<128xf32>
    %33 = vector.shape_cast %32 : vector<128xf32> to vector<1x128xf32>
    %34 = arith.mulf %31, %31 : vector<8x128xf32>
    %cst_13 = arith.constant dense<0.000000e+00> : vector<128xf32>
    %35 = vector.multi_reduction <add>, %34, %cst_13 [0] : vector<8x128xf32> to vector<128xf32>
    %36 = vector.shape_cast %35 : vector<128xf32> to vector<1x128xf32>
    %cst_14 = arith.constant 1.250000e-01 : f32
    %37 = vector.broadcast %cst_14 : f32 to vector<1x128xf32>
    %38 = arith.mulf %33, %37 : vector<1x128xf32>
    %cst_15 = arith.constant 1.250000e-01 : f32
    %39 = vector.broadcast %cst_15 : f32 to vector<1x128xf32>
    %40 = arith.mulf %36, %39 : vector<1x128xf32>
    %41 = arith.mulf %38, %38 : vector<1x128xf32>
    %42 = arith.subf %40, %41 : vector<1x128xf32>
    %cst_16 = arith.constant 0.000000e+00 : f32
    %43 = vector.broadcast %cst_16 : f32 to vector<1x128xf32>
    %44 = arith.maximumf %42, %43 : vector<1x128xf32>
    %45 = vector.broadcast %38 : vector<1x128xf32> to vector<8x128xf32>
    %46 = arith.subf %31, %45 : vector<8x128xf32>
    %cst_17 = arith.constant 9.99999974E-6 : f32
    %47 = vector.broadcast %cst_17 : f32 to vector<1x128xf32>
    %48 = arith.addf %44, %47 : vector<1x128xf32>
    %49 = math.rsqrt %48 : vector<1x128xf32>
    %50 = vector.broadcast %49 : vector<1x128xf32> to vector<8x128xf32>
    %51 = arith.mulf %46, %50 : vector<8x128xf32>
    %c0_18 = arith.constant 0 : index
    %c0_19 = arith.constant 0 : index
    %52 = vector.load %arg2[%c0_18, %c0_19] : memref<128x128xf32, #tpu.memory_space<vmem>>, vector<128x128xf32>
    %cst_20 = arith.constant dense<0.000000e+00> : vector<8x128xf32>
    %53 = tpu.matmul %51, %52, %cst_20 {dimension_numbers = #tpu.dot_dimension_numbers<[1], [0], [0], [1], [0, 0, 1, 1], [], []>} : vector<8x128xf32>, vector<128x128xf32>, vector<8x128xf32> -> vector<8x128xf32>
    %54 = vector.broadcast %2 : vector<1x128xf32> to vector<8x128xf32>
    %55 = arith.addf %53, %54 : vector<8x128xf32>
    %cst_21 = arith.constant 0.000000e+00 : f32
    %56 = vector.broadcast %cst_21 : f32 to vector<8x128xf32>
    %57 = arith.maximumf %55, %56 : vector<8x128xf32>
    %cst_22 = arith.constant dense<0.000000e+00> : vector<128xf32>
    %58 = vector.multi_reduction <add>, %57, %cst_22 [0] : vector<8x128xf32> to vector<128xf32>
    %59 = vector.shape_cast %58 : vector<128xf32> to vector<1x128xf32>
    %60 = arith.mulf %57, %57 : vector<8x128xf32>
    %cst_23 = arith.constant dense<0.000000e+00> : vector<128xf32>
    %61 = vector.multi_reduction <add>, %60, %cst_23 [0] : vector<8x128xf32> to vector<128xf32>
    %62 = vector.shape_cast %61 : vector<128xf32> to vector<1x128xf32>
    %cst_24 = arith.constant 1.250000e-01 : f32
    %63 = vector.broadcast %cst_24 : f32 to vector<1x128xf32>
    %64 = arith.mulf %59, %63 : vector<1x128xf32>
    %cst_25 = arith.constant 1.250000e-01 : f32
    %65 = vector.broadcast %cst_25 : f32 to vector<1x128xf32>
    %66 = arith.mulf %62, %65 : vector<1x128xf32>
    %67 = arith.mulf %64, %64 : vector<1x128xf32>
    %68 = arith.subf %66, %67 : vector<1x128xf32>
    %cst_26 = arith.constant 0.000000e+00 : f32
    %69 = vector.broadcast %cst_26 : f32 to vector<1x128xf32>
    %70 = arith.maximumf %68, %69 : vector<1x128xf32>
    %71 = vector.broadcast %64 : vector<1x128xf32> to vector<8x128xf32>
    %72 = arith.subf %57, %71 : vector<8x128xf32>
    %cst_27 = arith.constant 9.99999974E-6 : f32
    %73 = vector.broadcast %cst_27 : f32 to vector<1x128xf32>
    %74 = arith.addf %70, %73 : vector<1x128xf32>
    %75 = math.rsqrt %74 : vector<1x128xf32>
    %76 = vector.broadcast %75 : vector<1x128xf32> to vector<8x128xf32>
    %77 = arith.mulf %72, %76 : vector<8x128xf32>
    %78 = vector.broadcast %3 : vector<1x128xf32> to vector<8x128xf32>
    %79 = arith.mulf %77, %78 : vector<8x128xf32>
    %cst_28 = arith.constant dense<0.000000e+00> : vector<8xf32>
    %80 = vector.multi_reduction <add>, %79, %cst_28 [1] : vector<8x128xf32> to vector<8xf32>
    %81 = vector.shape_cast %80 : vector<8xf32> to vector<8x1xf32>
    %82 = vector.broadcast %4 : vector<1x1xf32> to vector<8x1xf32>
    %83 = arith.addf %81, %82 : vector<8x1xf32>
    %cst_29 = arith.constant 0.000000e+00 : f32
    %84 = vector.broadcast %cst_29 : f32 to vector<8x1xf32>
    %85 = arith.maximumf %83, %84 : vector<8x1xf32>
    %cst_30 = arith.constant 5.000000e-01 : f32
    %86 = vector.broadcast %cst_30 : f32 to vector<8x1xf32>
    %87 = arith.mulf %86, %85 : vector<8x1xf32>
    %88 = math.tanh %87 : vector<8x1xf32>
    %cst_31 = arith.constant 1.000000e+00 : f32
    %89 = vector.broadcast %cst_31 : f32 to vector<8x1xf32>
    %90 = arith.addf %88, %89 : vector<8x1xf32>
    %cst_32 = arith.constant 5.000000e-01 : f32
    %91 = vector.broadcast %cst_32 : f32 to vector<8x1xf32>
    %92 = arith.mulf %91, %90 : vector<8x1xf32>
    %c0_33 = arith.constant 0 : index
    %c0_34 = arith.constant 0 : index
    %93 = vector.load %arg4[%c0_33, %c0_34] : memref<8x1xf32, #tpu.memory_space<vmem>>, vector<8x1xf32>
    tpu.vector_store %arg4[%c0_33, %c0_34], %92 {strides = array<i32>} : memref<8x1xf32, #tpu.memory_space<vmem>>, vector<8x1xf32>,
    return
  }
}

</mosaic_0001>

<bundles_post_ra>
// kernel: tpu_custom_call.1
= control target key start
LH: loop header
LB: loop body
LE: loop exit
PB: predicated region body
PF: predicated region fallthrough
CT: control target
= control target key end

     0   :  { %9 = vsyncpa [#allocation3], 0  ;;  %s708_s0 = inlined_call_operand.hbm [shape: f32[8,256], index: 0, kind: input, shape index: {}]   ;;  %s709_s1 = inlined_call_operand.hbm [shape: f32[256,128], index: 1, kind: input, shape index: {}]   ;;  %s710_s2 = inlined_call_operand.hbm [shape: f32[128,128], index: 2, kind: input, shape index: {}]   ;;  %s711_s3 = inlined_call_operand.vmem [shape: f32[4,128], index: 3, kind: input, shape index: {}]   ;;  %s712_s4 = inlined_call_operand.vmem [shape: f32[8,1], index: 4, kind: output, shape index: {}]  }
   0x1   :  { %10 = vsyncpa [#allocation5], 0  ;;  %s601_s15 = smov [#allocation4]   ;;  %s531_s19 = scalar_lea.hbm %s709_s1, 4096 }
   0x2   :  { %s26_s16 = sshll.u32 %s601_s15, 4  ;;  %p532_p0 = scmp.ne.s32.totalorder %s709_s1, %s531_s19  ;;  %s27_s16 = int_to_ptr.vmem [resolvable:$true] %s26_s16 }
   0x3   :  { %p535_p1 = scmp.lt.u32.totalorder %s531_s19, %s709_s1 }
   0x5   :  { %p537_p2 = pnand %p535_p1, %p532_p0 }
   0x7   :  { %540 = shalt.err (!%p537_p2)
}
   0x8   :  { %s541_s24 = scalar_lea.vmem %s27_s16, 4096  ;;  %p546_p4 = scmp.lt.s32.totalorder %s27_s16, %s27_s16 }
   0x9   :  { %p542_p3 = scmp.ne.s32.totalorder %s27_s16, %s541_s24  ;;  %p547_p5 = scmp.lt.s32.totalorder %s541_s24, %s541_s24 }
   0xb   :  { %p548_p6 = por %p547_p5, %p546_p4 }
   0xd   :  { %p549_p7 = pnand %p548_p6, %p542_p3 }
   0xf   :  { %552 = shalt.err (!%p549_p7)
}
  0x10   :  { %s602_s25 = smov 128   ;;  %s603_s26 = smov 8  }
  0x11   :  { %32 = dma.hbm_to_vmem [thread:$0]  %s709_s1, 4096, %s27_s16, [#allocation5], %s602_s25, %s602_s25, %s603_s26  }
  0x12   :  { %s604_s29 = smov [#allocation2]   ;;  %s605_s5 = smov [#allocation6]  }
  0x13   :  { %s17_s30 = sshll.u32 %s604_s29, 4  ;;  %s38_s6 = sshll.u32 %s605_s5, 4  ;;  %s18_s30 = int_to_ptr.vmem [resolvable:$true] %s17_s30  ;;  %s39_s6 = int_to_ptr.vmem [resolvable:$true] %s38_s6 }
  0x14   :  { %s553_s9 = scalar_lea.hbm %s708_s0, 256 }
  0x15   :  { %p554_p8 = scmp.ne.s32.totalorder %s708_s0, %s553_s9  ;;  %p557_p9 = scmp.lt.u32.totalorder %s553_s9, %s708_s0 }
  0x17   :  { %p559_p10 = pnand %p557_p9, %p554_p8 }
  0x19   :  { %562 = shalt.err (!%p559_p10)
}
  0x1a   :  { %s563_s1 = scalar_lea.vmem %s18_s30, 256  ;;  %p568_p12 = scmp.lt.s32.totalorder %s18_s30, %s18_s30 }
  0x1b   :  { %p564_p11 = scmp.ne.s32.totalorder %s18_s30, %s563_s1  ;;  %p569_p13 = scmp.lt.s32.totalorder %s563_s1, %s563_s1 }
  0x1d   :  { %p570_p0 = por %p569_p13, %p568_p12 }
  0x1f   :  { %p571_p1 = pnand %p570_p0, %p564_p11 }
  0x21   :  { %574 = shalt.err (!%p571_p1)
}
  0x22   :  { %20 = dma.hbm_to_vmem [thread:$0]  %s708_s0, 256, %s18_s30, [#allocation3]  }
  0x23   :  { %s575_s18 = scalar_lea.hbm %s710_s2, 2048 }
  0x24   :  { %p576_p2 = scmp.ne.s32.totalorder %s710_s2, %s575_s18  ;;  %p579_p3 = scmp.lt.u32.totalorder %s575_s18, %s710_s2 }
  0x26   :  { %p581_p4 = pnand %p579_p3, %p576_p2 }
  0x28   :  { %584 = shalt.err (!%p581_p4)
}
  0x29   :  { %s585_s23 = scalar_lea.vmem %s39_s6, 2048  ;;  %p590_p6 = scmp.lt.s32.totalorder %s39_s6, %s39_s6 }
  0x2a   :  { %p586_p5 = scmp.ne.s32.totalorder %s39_s6, %s585_s23  ;;  %p591_p7 = scmp.lt.s32.totalorder %s585_s23, %s585_s23 }
  0x2c   :  { %p592_p8 = por %p591_p7, %p590_p6 }
  0x2e   :  { %p593_p9 = pnand %p592_p8, %p586_p5 }
  0x30   :  { %596 = shalt.err (!%p593_p9)
}
  0x31   :  { %44 = dma.hbm_to_vmem [thread:$0]  %s710_s2, 2048, %s39_s6, [#allocation5], %s602_s25, %s602_s25, %s603_s26  }
  0x32   :  { %597 = dma.done.wait [#allocation3], 256  }
  0x33   :  { %598 = vsyncadd [#allocation3], 4294967040 }
  0x34   :  { %599 = dma.done.wait [#allocation5], 6144  }
  0x35   :  { %600 = vsyncadd [#allocation5], 4294961152  ;;  %v119_v0 = vld [vmem:[#allocation4 + $0x80] sm:$0xff]  ;;  %v120_v1 = vld [vmem:[#allocation4 + $0x88] sm:$0xff]  ;;  %vm607_vm0 = vmmov 0   ;;  %vm362_vm1 = vcmask 7168  }
  0x36   :  { %v103_v2 = vld [vmem:[#allocation4] sm:$0xff]  ;;  %v457_v3 = vpack.c.bf16 %v120_v1, %v119_v0  ;;  %v104_v4 = vld [vmem:[#allocation4 + $0x8] sm:$0xff]  ;;  %v121_v5 = vld [vmem:[#allocation4 + $0x90] sm:$0xff] }
  0x37   :  { %v122_v6 = vld [vmem:[#allocation4 + $0x98] sm:$0xff]  ;;  %v459_v7 = vpack.c.bf16 %v104_v4, %v103_v2  ;;  %v105_v9 = vld [vmem:[#allocation4 + $0x10] sm:$0xff]  ;;  %v123_v11 = vld [vmem:[#allocation4 + $0xa0] sm:$0xff] }
  0x38   :  { %v461_v8 = vpack.c.bf16 %v122_v6, %v121_v5  ;;  %v106_v10 = vld [vmem:[#allocation4 + $0x18] sm:$0xff]  ;;  %458 = vmatprep.subr.bf16.mxu0 %v457_v3  ;;  %v124_v12 = vld [vmem:[#allocation4 + $0xa8] sm:$0xff]  ;;  %v107_v15 = vld [vmem:[#allocation4 + $0x20] sm:$0xff] }
  0x39   :  { %460 = vmatpush3.bf16.msra.mxu0 %v459_v7  ;;  %v463_v13 = vpack.c.bf16 %v106_v10, %v105_v9  ;;  %v465_v14 = vpack.c.bf16 %v124_v12, %v123_v11  ;;  %v108_v16 = vld [vmem:[#allocation4 + $0x28] sm:$0xff]  ;;  %v125_v17 = vld [vmem:[#allocation4 + $0xb0] sm:$0xff]  ;;  %v126_v18 = vld [vmem:[#allocation4 + $0xb8] sm:$0xff] }
  0x3a   :  { %462 = vmatprep.subr.bf16.mxu0 %v461_v8  ;;  %v467_v19 = vpack.c.bf16 %v108_v16, %v107_v15  ;;  %v469_v20 = vpack.c.bf16 %v126_v18, %v125_v17  ;;  %v109_v21 = vld [vmem:[#allocation4 + $0x30] sm:$0xff]  ;;  %v110_v22 = vld [vmem:[#allocation4 + $0x38] sm:$0xff]  ;;  %v127_v23 = vld [vmem:[#allocation4 + $0xc0] sm:$0xff] }
  0x3b   :  { %v128_v24 = vld [vmem:[#allocation4 + $0xc8] sm:$0xff]  ;;  %v676_v25 = vld [vmem:[#allocation2 + $0x8] sm:$0xff]  ;;  %v681_v28 = vld [vmem:[#allocation2] sm:$0xff]  ;;  %v471_v29 = vpack.c.bf16 %v110_v22, %v109_v21 }
  0x3c   :  { %v65_v26 = vrot.slane %v676_v25, 4  ;;  %v72_v27 = vmul.f32 %v676_v25, %v676_v25  ;;  %v59_v30 = vrot.slane %v681_v28, 4  ;;  %v71_v31 = vmul.f32 %v681_v28, %v681_v28  ;;  %v111_v33 = vld [vmem:[#allocation4 + $0x40] sm:$0xff]  ;;  %v112_v34 = vld [vmem:[#allocation4 + $0x48] sm:$0xff]  ;;  %v129_v37 = vld [vmem:[#allocation4 + $0xd0] sm:$0xff] }
  0x3d   :  { %464 = vmatpush3.bf16.msra.mxu0 %v463_v13  ;;  %v473_v32 = vpack.c.bf16 %v128_v24, %v127_v23  ;;  %v130_v38 = vld [vmem:[#allocation4 + $0xd8] sm:$0xff]  ;;  %v475_v43 = vpack.c.bf16 %v112_v34, %v111_v33  ;;  %v113_v47 = vld [vmem:[#allocation4 + $0x50] sm:$0xff]  ;;  %v131_v51 = vld [vmem:[#allocation4 + $0xe0] sm:$0xff] }
  0x3e   :  { %466 = vmatprep.subr.bf16.mxu0 %v465_v14  ;;  %v66_v35 = vadd.f32 %v65_v26, %v676_v25  ;;  %v79_v36 = vrot.slane %v72_v27, 4  ;;  %v60_v39 = vadd.f32 %v59_v30, %v681_v28  ;;  %v73_v40 = vrot.slane %v71_v31, 4  ;;  %v114_v48 = vld [vmem:[#allocation4 + $0x58] sm:$0xff]  ;;  %v132_v52 = vld [vmem:[#allocation4 + $0xe8] sm:$0xff]  ;;  %v115_v61 = vld [vmem:[#allocation4 + $0x60] sm:$0xff] }
  0x3f   :  { %v477_v46 = vpack.c.bf16 %v130_v38, %v129_v37  ;;  %v479_v57 = vpack.c.bf16 %v114_v48, %v113_v47  ;;  %v481_v60 = vpack.c.bf16 %v132_v52, %v131_v51  ;;  %v116_v62 = vld [vmem:[#allocation4 + $0x68] sm:$0xff]  ;;  %v133_v1 = vld [vmem:[#allocation4 + $0xf0] sm:$0xff]  ;;  %v134_v2 = vld [vmem:[#allocation4 + $0xf8] sm:$0xff] }
  0x40   :  { %v67_v41 = vrot.slane %v66_v35, 2  ;;  %v80_v42 = vadd.f32 %v79_v36, %v72_v27  ;;  %v61_v44 = vrot.slane %v60_v39, 2  ;;  %v74_v45 = vadd.f32 %v73_v40, %v71_v31  ;;  %v117_v11 = vld [vmem:[#allocation4 + $0x70] sm:$0xff]  ;;  %v118_v12 = vld [vmem:[#allocation4 + $0x78] sm:$0xff]  ;;  %v233_v33 = vld [vmem:[#allocation6 + $0x8] sm:$0xff] }
  0x41   :  { %468 = vmatpush3.bf16.msra.mxu0 %v467_v19  ;;  %v483_v7 = vpack.c.bf16 %v116_v62, %v115_v61  ;;  %v485_v10 = vpack.c.bf16 %v134_v2, %v133_v1  ;;  %v487_v18 = vpack.c.bf16 %v118_v12, %v117_v11  ;;  %v234_v36 = vld [vmem:[#allocation6 + $0x10] sm:$0xff]  ;;  %v235_v37 = vld [vmem:[#allocation6 + $0x18] sm:$0xff]  ;;  %v245_v51 = vld [vmem:[#allocation6 + $0x68] sm:$0xff] }
  0x42   :  { %470 = vmatprep.subr.bf16.mxu0 %v469_v20  ;;  %v68_v49 = vadd.f32 %v67_v41, %v66_v35  ;;  %v81_v50 = vrot.slane %v80_v42, 2  ;;  %v62_v53 = vadd.f32 %v61_v44, %v60_v39  ;;  %v75_v54 = vrot.slane %v74_v45, 2  ;;  %v237_v39 = vld [vmem:[#allocation6 + $0x28] sm:$0xff]  ;;  %v238_v40 = vld [vmem:[#allocation6 + $0x30] sm:$0xff]  ;;  %v239_v41 = vld [vmem:[#allocation6 + $0x38] sm:$0xff] }
  0x43   :  { %v606_v35 = vmov 0.0|0.0   ;;  %v493_v38 = vpack.c.bf16 %v235_v37, %v234_v36  ;;  %v240_v44 = vld [vmem:[#allocation6 + $0x40] sm:$0xff]  ;;  %v242_v47 = vld [vmem:[#allocation6 + $0x50] sm:$0xff]  ;;  %v243_v48 = vld [vmem:[#allocation6 + $0x58] sm:$0xff] }
  0x44   :  { %v69_v55 = vrot.slane %v68_v49, 1  ;;  %v82_v56 = vadd.f32 %v81_v50, %v80_v42  ;;  %v63_v58 = vrot.slane %v62_v53, 1  ;;  %v76_v59 = vadd.f32 %v75_v54, %v74_v45  ;;  %489 = vmatprep.subr.bf16.mxu1 %v606_v35  ;;  %v241_v45 = vld [vmem:[#allocation6 + $0x48] sm:$0xff]  ;;  %v244_v50 = vld [vmem:[#allocation6 + $0x60] sm:$0xff]  ;;  %v247_v54 = vld [vmem:[#allocation6 + $0x78] sm:$0xff] }
  0x45   :  { %472 = vmatpush3.bf16.msra.mxu0 %v471_v29  ;;  %v608_v42 = vmov 0.0   ;;  %v508_v52 = vpack.c.bf16 %v245_v51, %v244_v50 }
  0x46   :  { %474 = vmatprep.subr.bf16.mxu0 %v473_v32  ;;  %v70_v63 = vadd.f32 %v69_v55, %v68_v49  ;;  %v83_v0 = vrot.slane %v82_v56, 1  ;;  %v64_v3 = vadd.f32 %v63_v58, %v62_v53  ;;  %v77_v4 = vrot.slane %v76_v59, 1  ;;  %v232_v32 = vld [vmem:[#allocation6] sm:$0xff]  ;;  %454 = vmatprep.mubr.msk.f32.mxu1 %vm607_vm0, %v608_v42  ;;  %v246_v53 = vld [vmem:[#allocation6 + $0x70] sm:$0xff] }
  0x47   :  { %v490_v34 = vpack.c.bf16 %v233_v33, %v232_v32  ;;  %v505_v49 = vpack.c.bf16 %v243_v48, %v242_v47  ;;  %v511_v55 = vpack.c.bf16 %v247_v54, %v246_v53 }
  0x48   :  { %v84_v5 = vadd.f32 %v83_v0, %v82_v56  ;;  %v86_v6 = vmul.f32 0.125, %v70_v63  ;;  %v78_v8 = vadd.f32 %v77_v4, %v76_v59  ;;  %v85_v9 = vmul.f32 0.125, %v64_v3  ;;  %v696_v59 = vld [vmem:[%s711_s3] sm:$0xf] }
  0x49   :  { %476 = vmatpush3.bf16.msra.mxu0 %v475_v43  ;;  %491 = vmatpush3.bf16.msra.mxu1 %v490_v34  ;;  %v499_v43 = vpack.c.bf16 %v239_v41, %v238_v40  ;;  %v135_v56 = vlaneseq }
  0x4a   :  { %478 = vmatprep.subr.bf16.mxu0 %v477_v46  ;;  %v88_v13 = vmul.f32 0.125, %v84_v5  ;;  %v90_v14 = vmul.f32 %v86_v6, %v86_v6  ;;  %v87_v15 = vmul.f32 0.125, %v78_v8  ;;  %v89_v16 = vmul.f32 %v85_v9, %v85_v9  ;;  %492 = vmatprep.subr.bf16.mxu1 %v606_v35 }
  0x4b   :  { %v96_v24 = vsub.f32 %v676_v25, %v86_v6  ;;  %v95_v26 = vsub.f32 %v681_v28, %v85_v9  ;;  %v236_v25 = vld [vmem:[#allocation6 + $0x20] sm:$0xff]  ;;  %v502_v46 = vpack.c.bf16 %v241_v45, %v240_v44 }
  0x4c   :  { %v92_v17 = vsub.f32 %v88_v13, %v90_v14  ;;  %v91_v19 = vsub.f32 %v87_v15, %v89_v16  ;;  %v496_v28 = vpack.c.bf16 %v237_v39, %v236_v25 }
  0x4d   :  { %480 = vmatpush3.bf16.msra.mxu0 %v479_v57  ;;  %494 = vmatpush3.bf16.msra.mxu1 %v493_v38  ;;  %v690_v57 = vshrl.u32 %v135_v56, 7 }
  0x4e   :  { %482 = vmatprep.subr.bf16.mxu0 %v481_v60  ;;  %v94_v20 = vmax.f32 %v92_v17, 0.0  ;;  %v93_v21 = vmax.f32 %v91_v19, 0.0  ;;  %495 = vmatprep.subr.bf16.mxu1 %v606_v35 }
  0x4f   :  { %v137_v58 = vsub.s32 0, %v690_v57 }
  0x50   :  { %v98_v22 = vadd.f32 1e-05, %v94_v20  ;;  %v97_v23 = vadd.f32 1e-05, %v93_v21 }
  0x51   :  { %484 = vmatpush3.bf16.msra.mxu0 %v483_v7  ;;  %497 = vmatpush3.bf16.msra.mxu1 %v496_v28  ;;  %v138_v61 = vrot.slane %v696_v59, %v137_v58 }
  0x52   :  { %486 = vmatprep.subr.bf16.mxu0 %v485_v10  ;;  %521 = vrsqrt.f32 %v98_v22  ;;  %498 = vmatprep.subr.bf16.mxu1 %v606_v35 }
  0x53   :  { %523 = vrsqrt.f32 %v97_v23 }
  0x55   :  { %488 = vmatpush3.bf16.msra.mxu0 %v487_v18  ;;  %500 = vmatpush3.bf16.msra.mxu1 %v499_v43 }
  0x56   :  { %501 = vmatprep.subr.bf16.mxu1 %v606_v35 }
  0x59   :  { %503 = vmatpush3.bf16.msra.mxu1 %v502_v46 }
  0x5a   :  { %504 = vmatprep.subr.bf16.mxu1 %v606_v35 }
  0x5c   :  { %v522_v27 = vpop.eup %521 }
  0x5d   :  { %v524_v29 = vpop.eup %523  ;;  %v102_v30 = vmul.f32 %v522_v27, %v96_v24  ;;  %506 = vmatpush3.bf16.msra.mxu1 %v505_v49  ;;  %v250_v24 = vsub.s32 1, %v690_v57  ;;  %v347_v49 = vsub.s32 2, %v690_v57 }
  0x5e   :  { %v101_v31 = vmul.f32 %v524_v29, %v95_v26  ;;  %507 = vmatprep.subr.bf16.mxu1 %v606_v35 }
  0x5f   :  { %203 = vmatprep.mubr.f32.mxu0 %v102_v30  ;;  %v251_v26 = vrot.slane %v696_v59, %v250_v24  ;;  %v348_v51 = vrot.slane %v696_v59, %v347_v49 }
  0x60   :  { %204 = vmatmul.mubr.f32.vlgmr.msra.gmra.mrb[0].mxu0 %v101_v31 }
  0x61   :  { %509 = vmatpush3.bf16.msra.mxu1 %v508_v52 }
  0x62   :  { %510 = vmatprep.subr.bf16.mxu1 %v606_v35 }
  0x65   :  { %512 = vmatpush3.bf16.msra.mxu1 %v511_v55  ;;  %v354_v55 = vsub.s32 3, %v690_v57 }
  0x67   :  { %v355_v56 = vrot.slane %v696_v59, %v354_v55 }
 0x133   :  { %v402_v60 = vpop.f32.mrb[0].mxu0 }
 0x134   :  { %v403_v62 = vpop.f32.mrb[1].mxu0 }
 0x135   :  { %v404_v63 = vadd.f32 %v403_v62, %v402_v60 }
 0x137   :  { %v206_v0 = vadd.f32 %v404_v63, %v138_v61 }
 0x139   :  { %v209_v1 = vmax.f32 %v206_v0, 0.0 }
 0x13b   :  { %v210_v2 = vrot.slane %v209_v1, 4  ;;  %v216_v3 = vmul.f32 %v209_v1, %v209_v1 }
 0x13d   :  { %v211_v4 = vadd.f32 %v210_v2, %v209_v1  ;;  %v217_v5 = vrot.slane %v216_v3, 4 }
 0x13f   :  { %v218_v6 = vadd.f32 %v217_v5, %v216_v3  ;;  %v212_v7 = vrot.slane %v211_v4, 2 }
 0x141   :  { %v219_v8 = vrot.slane %v218_v6, 2  ;;  %v213_v9 = vadd.f32 %v212_v7, %v211_v4 }
 0x143   :  { %v220_v10 = vadd.f32 %v219_v8, %v218_v6  ;;  %v214_v11 = vrot.slane %v213_v9, 1 }
 0x145   :  { %v215_v12 = vadd.f32 %v214_v11, %v213_v9  ;;  %v221_v13 = vrot.slane %v220_v10, 1 }
 0x147   :  { %v222_v14 = vadd.f32 %v221_v13, %v220_v10  ;;  %v223_v15 = vmul.f32 0.125, %v215_v12 }
 0x149   :  { %v224_v16 = vmul.f32 0.125, %v222_v14  ;;  %v225_v17 = vmul.f32 %v223_v15, %v223_v15  ;;  %v228_v21 = vsub.f32 %v209_v1, %v223_v15 }
 0x14b   :  { %v226_v18 = vsub.f32 %v224_v16, %v225_v17 }
 0x14d   :  { %v227_v19 = vmax.f32 %v226_v18, 0.0 }
 0x14f   :  { %v229_v20 = vadd.f32 1e-05, %v227_v19 }
 0x151   :  { %525 = vrsqrt.f32 %v229_v20 }
 0x15b   :  { %v526_v22 = vpop.eup %525 }
 0x15c   :  { %v231_v23 = vmul.f32 %v526_v22, %v228_v21 }
 0x15e   :  { %455 = vmatmul.mubr.f32.vlgmr.msra.gmra.mrb[0].mxu1 %v231_v23 }
 0x231   :  { %v318_v27 = vpop.f32.mrb[0].mxu1 }
 0x232   :  { %v319_v29 = vadd.f32 %v318_v27, %v251_v26  ;;  %v456_v30 = vpop.f32.mrb[1].mxu1 }
 0x234   :  { %v322_v31 = vmax.f32 %v319_v29, 0.0 }
 0x236   :  { %v323_v32 = vrot.slane %v322_v31, 4  ;;  %v329_v33 = vmul.f32 %v322_v31, %v322_v31 }
 0x238   :  { %v324_v34 = vadd.f32 %v323_v32, %v322_v31  ;;  %v330_v35 = vrot.slane %v329_v33, 4 }
 0x23a   :  { %v331_v36 = vadd.f32 %v330_v35, %v329_v33  ;;  %v325_v37 = vrot.slane %v324_v34, 2 }
 0x23c   :  { %v332_v38 = vrot.slane %v331_v36, 2  ;;  %v326_v25 = vadd.f32 %v325_v37, %v324_v34 }
 0x23e   :  { %v333_v39 = vadd.f32 %v332_v38, %v331_v36  ;;  %v327_v28 = vrot.slane %v326_v25, 1 }
 0x240   :  { %v328_v40 = vadd.f32 %v327_v28, %v326_v25  ;;  %v334_v41 = vrot.slane %v333_v39, 1 }
 0x242   :  { %v335_v42 = vadd.f32 %v334_v41, %v333_v39  ;;  %v336_v43 = vmul.f32 0.125, %v328_v40 }
 0x244   :  { %v337_v44 = vmul.f32 0.125, %v335_v42  ;;  %v338_v45 = vmul.f32 %v336_v43, %v336_v43  ;;  %v341_v50 = vsub.f32 %v322_v31, %v336_v43 }
 0x246   :  { %v339_v46 = vsub.f32 %v337_v44, %v338_v45 }
 0x248   :  { %v340_v47 = vmax.f32 %v339_v46, 0.0 }
 0x24a   :  { %v342_v48 = vadd.f32 1e-05, %v340_v47 }
 0x24c   :  { %527 = vrsqrt.f32 %v342_v48 }
 0x256   :  { %v528_v52 = vpop.eup %527 }
 0x257   :  { %v344_v53 = vmul.f32 %v528_v52, %v341_v50 }
 0x259   :  { %v349_v54 = vmul.f32 %v348_v51, %v344_v53 }
 0x25b   :  { %350 = vadd.xlane.f32.xlu0 %v349_v54 }
 0x2e8   :  { %v351_v58 = vpop.xlane.xlu0 %350 }
 0x2e9   :  { %v356_v60 = vadd.f32 %v355_v56, %v351_v58 }
 0x2eb   :  { %v357_v61 = vmax.f32 %v356_v60, 0.0 }
 0x2ed   :  { %v358_v62 = vmul.f32 0.5, %v357_v61 }
 0x2ef   :  { %529 = vtanh.f32 %v358_v62 }
 0x2f9   :  { %v530_v63 = vpop.eup %529 }
 0x2fa   :  { %v360_v0 = vadd.f32 1.0, %v530_v63 }
 0x2fc   :  { %v361_v1 = vmul.f32 0.5, %v360_v0 }
 0x2fe   :  { %363 = vst.msk [vmem:[%s712_s4] sm:$0xff] %vm362_vm1, %v361_v1 }
 0x2ff   :  { %368 = vsyncpa [#allocation3], 1 }
 0x300   :  { %369 = vsyncpa [#allocation5], 1 }

</bundles_post_ra>
